<compile_context>
chip_gen: v5e
topology: v5e:2x2
jax: 0.10.0
libtpu: 0.0.40
codegen_flags: <defaults>
</compile_context>

<pallas_src>
import functools

import jax
import jax.numpy as jnp
from jax.experimental import pallas as pl
from jax.experimental.pallas import tpu as pltpu

_LANES = 128
_SUBLANES = 8


def _round_up(a: int, b: int) -> int:
    return (a + b - 1) // b * b


def _itm_head_kernel(x_ref, w_ref, b_ref, o_ref):
    # x_ref: (tm, H) streaming row tile
    # w_ref: (H, 128) lane-padded weight (resident; constant index map)
    # b_ref: (1, 128) lane-padded bias   (resident)
    # o_ref: (tm, n_out) only the real class columns are written back
    n_out = o_ref.shape[-1]
    y = jnp.dot(x_ref[...], w_ref[...], preferred_element_type=jnp.float32)
    y = y + b_ref[...]
    o_ref[...] = y[:, :n_out].astype(o_ref.dtype)


def prepare_itm_head_params(w_t, b, dtype=jnp.float32):
    """One-time (init-time) padding of the fc parameters.

    w_t: [H, 2] (transpose of torch fc.weight), b: [2]
    Returns (w_pad [H, 128], b_pad [1, 128], n_out).
    """
    H, n_out = w_t.shape
    n_pad = _round_up(n_out, _LANES)
    w_pad = jnp.zeros((H, n_pad), dtype).at[:, :n_out].set(w_t.astype(dtype))
    b_pad = jnp.zeros((1, n_pad), jnp.float32).at[:, :n_out].set(
        b.astype(jnp.float32))
    return w_pad, b_pad, n_out


@functools.partial(jax.jit, static_argnames=("num_classes", "tm"))
def itm_head(x, w_pad, b_pad, *, num_classes=2, tm=512):
    """ITMHead forward: x [..., H] -> logits [..., num_classes]."""
    H = x.shape[-1]
    n_pad = w_pad.shape[-1]
    lead = x.shape[:-1]
    M = 1
    for d in lead:
        M *= int(d)
    x2 = x.reshape(M, H)

    itemsize = x2.dtype.itemsize
    w_itemsize = w_pad.dtype.itemsize

    # ---- row-tile selection (VMEM budget + megacore split) ----
    # Keep the streaming x double-buffer under ~20 MiB so the whole kernel fits
    # comfortably on every generation (v7x has only 64 MiB VMEM per TC).
    x_budget = 20 * 1024 * 1024
    tm_cap = max(_SUBLANES,
                 (x_budget // (2 * H * itemsize)) // _SUBLANES * _SUBLANES)
    tm_eff = min(tm, tm_cap, _round_up(M, _SUBLANES))
    # v7x: ensure >= 2 grid steps when there is enough work, so the "parallel"
    # rows axis shards across both TensorCores (no-op on v5e/v6e).
    if M > 2 * _SUBLANES and pl.cdiv(M, tm_eff) < 2:
        tm_eff = _round_up(pl.cdiv(M, 2), _SUBLANES)

    grid = (pl.cdiv(M, tm_eff),)  # partial last block handled by Pallas

    # ---- scoped-VMEM limit (v5e default is only 16 MiB) ----
    vmem_need = (2 * tm_eff * H * itemsize          # x double-buffer
                 + 2 * H * n_pad * w_itemsize       # resident weight (x2 conservative)
                 + 2 * n_pad * 4                    # bias
                 + 2 * tm_eff * num_classes * itemsize)  # output double-buffer
    vmem_limit = min(max(32 * 1024 * 1024, int(vmem_need * 5 // 4)),
                     56 * 1024 * 1024)

    # Advisory cost: real FLOPs (N=2), dominated by the x HBM read.
    cost = pl.CostEstimate(
        flops=2 * M * H * num_classes,
        transcendentals=0,
        bytes_accessed=(M * H * itemsize
                        + H * n_pad * w_itemsize
                        + n_pad * 4
                        + M * num_classes * itemsize),
    )

    out = pl.pallas_call(
        _itm_head_kernel,
        out_shape=jax.ShapeDtypeStruct((M, num_classes), x.dtype),
        grid_spec=pltpu.PrefetchScalarGridSpec(
            num_scalar_prefetch=0,
            grid=grid,
            in_specs=[
                pl.BlockSpec((tm_eff, H), lambda i: (i, 0)),   # x rows (stream)
                pl.BlockSpec((H, n_pad), lambda i: (0, 0)),    # weight (resident)
                pl.BlockSpec((1, n_pad), lambda i: (0, 0)),    # bias (resident)
            ],
            out_specs=pl.BlockSpec((tm_eff, num_classes), lambda i: (i, 0)),
        ),
        compiler_params=pltpu.CompilerParams(
            dimension_semantics=("parallel",),   # rows shard across TCs on v7x
            vmem_limit_bytes=vmem_limit,
        ),
        cost_estimate=cost,
    )(x2, w_pad, b_pad)

    return out.reshape(*lead, num_classes)


def _reference(x, w_t, b):
    return x @ w_t + b


if __name__ == "__main__":
    H = 32

    key = jax.random.PRNGKey(0)
    kx, kw, kb, kx2 = jax.random.split(key, 4)

    # fc.weight is [2, H] in torch; we pass its transpose [H, 2].
    w_t = jax.random.normal(kw, (H, 2), dtype=jnp.float32) * 0.02
    b = jax.random.normal(kb, (2,), dtype=jnp.float32) * 0.02

    # One-time param padding ("module init"), kept out of the per-call path.
    w_pad, b_pad, n_out = prepare_itm_head_params(w_t, b, jnp.float32)

    # Case 1: pooled features [B, H] (typical ITM head input).
    x1 = jax.random.normal(kx, (2, H), dtype=jnp.float32)
    out1 = jax.block_until_ready(itm_head(x1, w_pad, b_pad, num_classes=n_out))
    ref1 = _reference(x1, w_t, b)
    assert out1.shape == (2, 2)
    assert jnp.allclose(out1, ref1, atol=1e-5, rtol=1e-5), "case1 mismatch"

    # Case 2: extra leading dim + non-tile-multiple M (exercises the partial
    # last block path with no wrapper-side padding).
    x2 = jax.random.normal(kx2, (3, 8, H), dtype=jnp.float32)
    out2 = jax.block_until_ready(itm_head(x2, w_pad, b_pad, num_classes=n_out))
    ref2 = _reference(x2, w_t, b)
    assert out2.shape == (3, 8, 2)
    assert jnp.allclose(out2, ref2, atol=1e-5, rtol=1e-5), "case2 mismatch"

    print("KERNEL_OK")
</pallas_src>

<mosaic_0001>
module attributes {stable_mosaic.version = 11 : i64} {
  func.func @_itm_head_kernel(%arg0: i32, %arg1: memref<8x32xf32, #tpu.memory_space<vmem>>, %arg2: memref<32x128xf32, #tpu.memory_space<vmem>>, %arg3: memref<1x128xf32, #tpu.memory_space<vmem>>, %arg4: memref<8x2xf32, #tpu.memory_space<vmem>>) attributes {dimension_semantics = [#tpu.dimension_semantics<parallel>], iteration_bounds = array<i64: 1>, scalar_prefetch = 0 : i64, scratch_operands = 0 : i64, tpu.core_type = #tpu.core_type<tc>, window_params = [{transform_indices = @transform_0, window_bounds = array<i64: 8, 32>}, {pipeline_mode = #tpu.pipeline_mode<synchronous>, transform_indices = @transform_1, window_bounds = array<i64: 32, 128>}, {pipeline_mode = #tpu.pipeline_mode<synchronous>, transform_indices = @transform_2, window_bounds = array<i64: 1, 128>}, {transform_indices = @transform_3, window_bounds = array<i64: 8, 2>}]} {
    %c0 = arith.constant 0 : index
    %c0_0 = arith.constant 0 : index
    %0 = vector.load %arg1[%c0, %c0_0] : memref<8x32xf32, #tpu.memory_space<vmem>>, vector<8x32xf32>
    %c0_1 = arith.constant 0 : index
    %c0_2 = arith.constant 0 : index
    %1 = vector.load %arg2[%c0_1, %c0_2] : memref<32x128xf32, #tpu.memory_space<vmem>>, vector<32x128xf32>
    %cst = arith.constant dense<0.000000e+00> : vector<8x128xf32>
    %2 = tpu.matmul %0, %1, %cst {dimension_numbers = #tpu.dot_dimension_numbers<[1], [0], [0], [1], [0, 0, 1, 1], [], []>} : vector<8x32xf32>, vector<32x128xf32>, vector<8x128xf32> -> vector<8x128xf32>
    %c0_3 = arith.constant 0 : index
    %c0_4 = arith.constant 0 : index
    %3 = vector.load %arg3[%c0_3, %c0_4] : memref<1x128xf32, #tpu.memory_space<vmem>>, vector<1x128xf32>
    %4 = vector.broadcast %3 : vector<1x128xf32> to vector<8x128xf32>
    %5 = arith.addf %2, %4 : vector<8x128xf32>
    %6 = vector.extract_strided_slice %5 {offsets = [0, 0], sizes = [8, 2], strides = [1, 1]} : vector<8x128xf32> to vector<8x2xf32>
    %c0_5 = arith.constant 0 : index
    %c0_6 = arith.constant 0 : index
    %7 = vector.load %arg4[%c0_5, %c0_6] : memref<8x2xf32, #tpu.memory_space<vmem>>, vector<8x2xf32>
    tpu.vector_store %arg4[%c0_5, %c0_6], %6 {strides = array<i32>} : memref<8x2xf32, #tpu.memory_space<vmem>>, vector<8x2xf32>,
    return
  }
  func.func @transform_0(%arg0: i32) -> (i32, i32) {
    %c0_i32 = arith.constant 0 : i32
    %c0_i32_0 = arith.constant 0 : i32
    return %arg0, %c0_i32 : i32, i32
  }
  func.func @transform_1(%arg0: i32) -> (i32, i32) {
    %c0_i32 = arith.constant 0 : i32
    %c0_i32_0 = arith.constant 0 : i32
    %c0_i32_1 = arith.constant 0 : i32
    return %c0_i32, %c0_i32_0 : i32, i32
  }
  func.func @transform_2(%arg0: i32) -> (i32, i32) {
    %c0_i32 = arith.constant 0 : i32
    %c0_i32_0 = arith.constant 0 : i32
    %c0_i32_1 = arith.constant 0 : i32
    return %c0_i32, %c0_i32_0 : i32, i32
  }
  func.func @transform_3(%arg0: i32) -> (i32, i32) {
    %c0_i32 = arith.constant 0 : i32
    %c0_i32_0 = arith.constant 0 : i32
    return %arg0, %c0_i32 : i32, i32
  }
}

</mosaic_0001>

<bundles_post_ra>
// kernel: itm_head.1
= control target key start
LH: loop header
LB: loop body
LE: loop exit
PB: predicated region body
PF: predicated region fallthrough
CT: control target
= control target key end

     0   :  { %8 = vsyncpa [#allocation3], 0  ;;  %s234_s0 = inlined_call_operand.hbm [shape: f32[2,32], index: 0, kind: input, shape index: {}]   ;;  %s235_s1 = inlined_call_operand.hbm [shape: f32[32,128], index: 1, kind: input, shape index: {}]   ;;  %s236_s2 = inlined_call_operand.vmem [shape: f32[1,128], index: 2, kind: input, shape index: {}]   ;;  %s237_s3 = inlined_call_operand.hbm [shape: f32[2,2], index: 3, kind: output, shape index: {}]  }
   0x1   :  { %9 = vsyncpa [#allocation6], 0 }
   0x2   :  { %10 = vsyncpa [#allocation4], 0 }
   0x3   :  { %14 = vsyncadd [#allocation3], 96  ;;  %s15_s14 = sshll.u32 %s234_s0, 4  ;;  %s189_s15 = smov [#allocation2]   ;;  %s16_s14 = int_to_ptr.hbm [resolvable:$true] %s15_s14 }
   0x4   :  { %s17_s16 = sshll.u32 %s189_s15, 4  ;;  %s28_s19 = sshll.u32 %s235_s1, 4  ;;  %s18_s16 = int_to_ptr.vmem [resolvable:$true] %s17_s16  ;;  %s29_s19 = int_to_ptr.hbm [resolvable:$true] %s28_s19 }
   0x5   :  { %s190_s20 = smov 32   ;;  %s191_s21 = smov 2  }
   0x6   :  { %23 = dma.hbm_to_vmem [thread:$0]  %s16_s14, 32, %s18_s16, [#allocation3], %s190_s20, %s190_s20, %s191_s21  }
   0x7   :  { %s192_s22 = smov [#allocation5]   ;;  %s193_s24 = smov 128  }
   0x8   :  { %s30_s23 = sshll.u32 %s192_s22, 4  ;;  %s194_s0 = smov 8   ;;  %s31_s23 = int_to_ptr.vmem [resolvable:$true] %s30_s23 }
   0x9   :  { %36 = dma.hbm_to_vmem [thread:$0]  %s29_s19, 512, %s31_s23, [#allocation6], %s193_s24, %s193_s24, %s194_s0  }
   0xa   :  { %183 = dma.done.wait [#allocation3], 128  }
   0xb   :  { %184 = vsyncadd [#allocation3], 4294967168 }
   0xc   :  { %185 = dma.done.wait [#allocation6], 512  }
   0xd   :  { %186 = vsyncadd [#allocation6], 4294966784  ;;  %v51_v0 = vld [vmem:[#allocation5 + $0x18] sm:$0xff]  ;;  %v50_v1 = vld [vmem:[#allocation5 + $0x10] sm:$0xff]  ;;  %vm56_vm0 = vcmask 261120   ;;  %vm80_vm1 = vcmask 15360  }
   0xe   :  { %72 = vmatpush.msra.mxu0 %v51_v0  ;;  %v49_v2 = vld [vmem:[#allocation5 + $0x8] sm:$0xff]  ;;  %v48_v3 = vld [vmem:[#allocation5] sm:$0xff]  ;;  %v47_v4 = vld [vmem:[#allocation2] sm:$0xff] }
   0xf   :  { %v110_v5 = vld [vmem:[%s236_s2] ss:$0 sm:$0xff] }
  0x10   :  { %73 = vmatpush.msra.mxu0 %v50_v1 }
  0x12   :  { %74 = vmatpush.msra.mxu0 %v49_v2 }
  0x14   :  { %75 = vmatpush.msra.mxu0 %v48_v3 }
  0x15   :  { %102 = vmatmul.msk.f32.vlgmr.msra.gmra.mxu0 %vm56_vm0, %v47_v4 }
  0x92   :  { %v77_v6 = vpop.f32.mrf.mxu0 }
  0x93   :  { %v78_v7 = vadd.f32 %v110_v5, %v77_v6 }
  0x95   :  { %81 = vst.msk [vmem:[#allocation7] sm:$0xff] %vm80_vm1, %v78_v7 }
  0x96   :  { %85 = vsyncadd [#allocation4], 96  ;;  %s88_s28 = sshll.u32 %s237_s3, 4  ;;  %s195_s29 = smov [#allocation7]   ;;  %s89_s28 = int_to_ptr.hbm [resolvable:$true] %s88_s28 }
  0x97   :  { %s86_s30 = sshll.u32 %s195_s29, 4  ;;  %s87_s30 = int_to_ptr.vmem [resolvable:$true] %s86_s30 }
  0x98   :  { %94 = dma.vmem_to_hbm [thread:$0]  %s87_s30, 32, %s89_s28, [#allocation4], %s190_s20, %s190_s20, %s191_s21  }
  0x99   :  { %187 = dma.done.wait [#allocation4], 128  }
  0x9a   :  { %188 = vsyncadd [#allocation4], 4294967168 }
  0x9b   :  { %99 = vsyncpa [#allocation3], 1 }
  0x9c   :  { %100 = vsyncpa [#allocation6], 1 }
  0x9d   :  { %101 = vsyncpa [#allocation4], 1 }

</bundles_post_ra>
